<compile_context>
chip_gen: v7x
topology: tpu7x:2x2x1
jax: 0.10.0
libtpu: 0.0.40
codegen_flags: <defaults>
</compile_context>

<pallas_src>
import functools

import jax
import jax.numpy as jnp
from jax.experimental import pallas as pl
from jax.experimental.pallas import tpu as pltpu


def _upconv_kernel(x_ref, w_ref, b_ref, o_ref):
    # x_ref: (1, Cin, T)   spatial tile of one batch element (NCHW layout, free reshape)
    # w_ref: (Cout, Cin)   1x1 ConvTranspose2d weight with BN scale pre-folded
    # b_ref: (Cout, 1)     folded BN bias = beta - mean * scale
    # o_ref: (1, Cout, T)  lane-dense output tile (T = multiple of 128 or full H*W)
    x = x_ref[0]                                                      # (Cin, T)
    y = jnp.dot(w_ref[...], x, preferred_element_type=jnp.float32)    # (Cout, T), f32 acc
    y = y + b_ref[...]                                                # per-channel bias
    o_ref[0] = jnp.maximum(y, 0.0).astype(o_ref.dtype)


def up_conv_forward(x_nchw, weight, gamma, beta, running_mean, running_var,
                    *, eps=1e-5, tile_hw=2048):
    """x_nchw: (N, Cin, H, W). weight: (Cin, Cout, 1, 1) (ConvTranspose2d layout)."""
    n, cin, h, w = x_nchw.shape
    cout = weight.shape[1]
    hw = h * w

    # Fold BN into the weight / a per-channel bias (inference-mode running stats).
    scale = (gamma.astype(jnp.float32)
             / jnp.sqrt(running_var.astype(jnp.float32) + eps))             # (Cout,)
    bias = beta.astype(jnp.float32) - running_mean.astype(jnp.float32) * scale
    w2d = weight[:, :, 0, 0].astype(jnp.float32)                            # (Cin, Cout)
    w_folded = (w2d.T * scale[:, None]).astype(x_nchw.dtype)                # (Cout, Cin)
    bias2d = bias.reshape(cout, 1)                                          # (Cout, 1)

    # Free reshape only (NCHW is already channels-major): no HBM layout passes.
    x_rows = x_nchw.reshape(n, cin, hw)

    # Spatial tile: largest that fits comfortably in the default scoped VMEM;
    # either a multiple of 128 (lane-dense) or the full spatial extent.
    tile = min(tile_hw, hw)
    if tile < hw:
        tile = max(128, (tile // 128) * 128)
    grid = (n, pl.cdiv(hw, tile))

    out_rows = pl.pallas_call(
        _upconv_kernel,
        out_shape=jax.ShapeDtypeStruct((n, cout, hw), x_nchw.dtype),
        grid_spec=pltpu.PrefetchScalarGridSpec(
            num_scalar_prefetch=0,
            grid=grid,
            in_specs=[
                pl.BlockSpec((1, cin, tile), lambda b, s: (b, 0, s)),
                pl.BlockSpec((cout, cin), lambda b, s: (0, 0)),
                pl.BlockSpec((cout, 1), lambda b, s: (0, 0)),
            ],
            out_specs=pl.BlockSpec((1, cout, tile), lambda b, s: (b, 0, s)),
        ),
        compiler_params=pltpu.CompilerParams(
            dimension_semantics=("parallel", "parallel")),
    )(x_rows, w_folded, bias2d)

    # Nearest-neighbor 2x upsample of the (already conv+BN+ReLU'd) result:
    # one broadcast + free reshape, writing the final NCHW output directly.
    y = out_rows.reshape(n, cout, h, w)
    y_up = jnp.broadcast_to(y[:, :, :, None, :, None],
                            (n, cout, h, 2, w, 2)).reshape(n, cout, 2 * h, 2 * w)
    return y_up


def up_conv_reference(x_nchw, weight, gamma, beta, running_mean, running_var,
                      *, eps=1e-5):
    # Reference follows the original module order: upsample -> conv -> BN -> ReLU.
    x_up = jnp.repeat(jnp.repeat(x_nchw, 2, axis=2), 2, axis=3)
    w2d = weight[:, :, 0, 0]                                         # (Cin, Cout)
    y = jnp.einsum("nchw,cd->ndhw", x_up, w2d)
    scale = gamma / jnp.sqrt(running_var + eps)
    bias = beta - running_mean * scale
    y = y * scale[None, :, None, None] + bias[None, :, None, None]
    return jnp.maximum(y, 0.0)


if __name__ == "__main__":
    key = jax.random.PRNGKey(0)
    k_x, k_w, k_g, k_b, k_m, k_v = jax.random.split(key, 6)

    N, Cin, H, W = 2, 4, 16, 16
    Cout = 8

    x = jax.random.normal(k_x, (N, Cin, H, W), dtype=jnp.float32)
    # ConvTranspose2d weight layout: (in_channels, out_channels, kH, kW)
    weight = jax.random.normal(k_w, (Cin, Cout, 1, 1), dtype=jnp.float32) * 0.3
    gamma = 1.0 + 0.1 * jax.random.normal(k_g, (Cout,), dtype=jnp.float32)
    beta = 0.1 * jax.random.normal(k_b, (Cout,), dtype=jnp.float32)
    running_mean = 0.05 * jax.random.normal(k_m, (Cout,), dtype=jnp.float32)
    running_var = jnp.abs(jax.random.normal(k_v, (Cout,), dtype=jnp.float32)) + 0.5

    fwd = jax.jit(functools.partial(up_conv_forward, eps=1e-5, tile_hw=2048))
    out = fwd(x, weight, gamma, beta, running_mean, running_var)
    out = jax.block_until_ready(out)

    ref = up_conv_reference(x, weight, gamma, beta, running_mean, running_var)
    assert out.shape == (N, Cout, 2 * H, 2 * W), out.shape
    assert jnp.allclose(out, ref, atol=1e-4, rtol=1e-4), \
        float(jnp.max(jnp.abs(out - ref)))

    print("KERNEL_OK")
</pallas_src>

<mosaic_0001>
module attributes {stable_mosaic.version = 11 : i64} {
  func.func @_upconv_kernel(%arg0: i32, %arg1: i32, %arg2: memref<1x4x256xf32, #tpu.memory_space<vmem>>, %arg3: memref<8x4xf32, #tpu.memory_space<vmem>>, %arg4: memref<8x1xf32, #tpu.memory_space<vmem>>, %arg5: memref<1x8x256xf32, #tpu.memory_space<vmem>>) attributes {dimension_semantics = [#tpu.dimension_semantics<parallel>, #tpu.dimension_semantics<parallel>], iteration_bounds = array<i64: 2, 1>, scalar_prefetch = 0 : i64, scratch_operands = 0 : i64, tpu.core_type = #tpu.core_type<tc>, window_params = [{transform_indices = @transform_0, window_bounds = array<i64: 1, 4, 256>}, {pipeline_mode = #tpu.pipeline_mode<synchronous>, transform_indices = @transform_1, window_bounds = array<i64: 8, 4>}, {pipeline_mode = #tpu.pipeline_mode<synchronous>, transform_indices = @transform_2, window_bounds = array<i64: 8, 1>}, {transform_indices = @transform_3, window_bounds = array<i64: 1, 8, 256>}]} {
    %c0 = arith.constant 0 : index
    %c0_0 = arith.constant 0 : index
    %c0_1 = arith.constant 0 : index
    %0 = vector.load %arg2[%c0, %c0_0, %c0_1] : memref<1x4x256xf32, #tpu.memory_space<vmem>>, vector<1x4x256xf32>
    %1 = vector.shape_cast %0 : vector<1x4x256xf32> to vector<4x256xf32>
    %c0_2 = arith.constant 0 : index
    %c0_3 = arith.constant 0 : index
    %2 = vector.load %arg3[%c0_2, %c0_3] : memref<8x4xf32, #tpu.memory_space<vmem>>, vector<8x4xf32>
    %cst = arith.constant dense<0.000000e+00> : vector<8x256xf32>
    %3 = tpu.matmul %2, %1, %cst {dimension_numbers = #tpu.dot_dimension_numbers<[1], [0], [0], [1], [0, 0, 1, 1], [], []>} : vector<8x4xf32>, vector<4x256xf32>, vector<8x256xf32> -> vector<8x256xf32>
    %c0_4 = arith.constant 0 : index
    %c0_5 = arith.constant 0 : index
    %4 = vector.load %arg4[%c0_4, %c0_5] : memref<8x1xf32, #tpu.memory_space<vmem>>, vector<8x1xf32>
    %5 = vector.broadcast %4 : vector<8x1xf32> to vector<8x256xf32>
    %6 = arith.addf %3, %5 : vector<8x256xf32>
    %cst_6 = arith.constant 0.000000e+00 : f32
    %7 = vector.broadcast %cst_6 : f32 to vector<8x256xf32>
    %8 = arith.maximumf %6, %7 : vector<8x256xf32>
    %c0_7 = arith.constant 0 : index
    %c0_8 = arith.constant 0 : index
    %c0_9 = arith.constant 0 : index
    %9 = vector.load %arg5[%c0_7, %c0_8, %c0_9] : memref<1x8x256xf32, #tpu.memory_space<vmem>>, vector<1x8x256xf32>
    %10 = vector.shape_cast %9 : vector<1x8x256xf32> to vector<8x256xf32>
    %11 = vector.shape_cast %8 : vector<8x256xf32> to vector<1x8x256xf32>
    tpu.vector_store %arg5[%c0_7, %c0_8, %c0_9], %11 {strides = array<i32>} : memref<1x8x256xf32, #tpu.memory_space<vmem>>, vector<1x8x256xf32>,
    return
  }
  func.func @transform_0(%arg0: i32, %arg1: i32) -> (i32, i32, i32) {
    %c0_i32 = arith.constant 0 : i32
    %c0_i32_0 = arith.constant 0 : i32
    return %arg0, %c0_i32, %arg1 : i32, i32, i32
  }
  func.func @transform_1(%arg0: i32, %arg1: i32) -> (i32, i32) {
    %c0_i32 = arith.constant 0 : i32
    %c0_i32_0 = arith.constant 0 : i32
    %c0_i32_1 = arith.constant 0 : i32
    return %c0_i32, %c0_i32_0 : i32, i32
  }
  func.func @transform_2(%arg0: i32, %arg1: i32) -> (i32, i32) {
    %c0_i32 = arith.constant 0 : i32
    %c0_i32_0 = arith.constant 0 : i32
    %c0_i32_1 = arith.constant 0 : i32
    return %c0_i32, %c0_i32_0 : i32, i32
  }
  func.func @transform_3(%arg0: i32, %arg1: i32) -> (i32, i32, i32) {
    %c0_i32 = arith.constant 0 : i32
    %c0_i32_0 = arith.constant 0 : i32
    return %arg0, %c0_i32, %arg1 : i32, i32, i32
  }
}

</mosaic_0001>

<bundles_post_ra>
// kernel: up_conv_forward.1
= control target key start
LH: loop header
LB: loop body
LE: loop exit
PB: predicated region body
PF: predicated region fallthrough
CT: control target
= control target key end

     0   :  { %s481_s12 = smov 0   ;;  %s483_s13 = smov 0   ;;  %s520_s0 = inlined_call_operand.vmem [shape: f32[2,4,256], index: 0, kind: input, shape index: {}]   ;;  %s521_s1 = inlined_call_operand.vmem [shape: f32[8,4], index: 1, kind: input, shape index: {}]   ;;  %s522_s2 = inlined_call_operand.vmem [shape: f32[8,1], index: 2, kind: input, shape index: {}]   ;;  %s523_s3 = inlined_call_operand.vmem [shape: f32[2,8,256], index: 3, kind: output, shape index: {}]  }
   0x1   :  { %s485_s14 = smov 0  }
   0x2 LB: > { %s25_s15 = sadd.s32 1, %s453_s13  ;;  %p395_p0 = scmp.ge.s32.totalorder %s457_s14, 1  ;;  %s457_s14 = sphi %s485_s14, %s13_s14   ;;  %s453_s13 = sphi %s483_s13, %s525_s13   ;;  %s449_s12 = sphi %s481_s12, %s524_s12  }
   0x3   : > { %p27_p1 = scmp.ge.s32.totalorder %s25_s15, 2  ;;  %p158_p2 = scmp.lt.s32.totalorder %s457_s14, 3 }
   0x5   : > { %s527_s15 = smov (%p27_p1, %s25_s15), 0  ;;  %p159_p3 = pnand %p395_p0, %p158_p2 }
   0x6   : > { %p191_p4 = scmp.lt.s32.totalorder (!%p159_p3), %s449_s12, 1  ;;  %v459_v0 = vmov (!%p159_p3), 0.0   ;;  %v460_v1 = vmov (!%p159_p3), 0   ;;  %v212_v2 = vld [vmem:[%s522_s2] sm:$0xff] (!%p159_p3)  ;;  %vm224_vm0 = vcmask (!%p159_p3), 1043456   ;;  %vm220_vm1 = vcmask (!%p159_p3), 31744  }
   0x7   : > { %162 = sbr.rel (%p159_p3) target bundleno = 240 (0xf0), region = 32  ;;  %293 = vmatprep.mubr.f32.mxu0 (!%p159_p3), %v459_v0  ;;  %433 = vset.pattern.permute.xlu0 (!%p159_p3), %v460_v1  ;;  %v211_v5 = vld [vmem:[%s521_s1] sm:$0xff] (!%p159_p3) }
   0x8   : > { %215 = vperm.xlu0 (!%p159_p3), %433, %v212_v2  }
   0xe   : > { %s529_s12 = smov (!%p191_p4, %s449_s12), 1 }
   0xf   : > { %s405_s18 = sshll.u32 %s529_s12, 3  ;;  %s406_s24 = sshll.u32 %s529_s12, 4 }
  0x10   : > { %s198_s21 = scalar_lea.vmem %s520_s0, %s405_s18  ;;  %s208_s27 = scalar_lea.vmem %s523_s3, %s406_s24 }
  0x11   : > { %v210_v3 = vld [vmem:[%s198_s21] sm:$0xff] }
  0x12   : > { %v219_v4 = vcombine.high %v210_v3, %v210_v3 }
  0x14   : > { %400 = vmatprep.subr.msk.mxu0 %vm224_vm0, %v219_v4 }
  0x15   : > { %401 = vmatpush1.msk.msra.mxu0 %vm224_vm0, %v210_v3 }
  0x16   : > { %402 = vmatmul.mubr.msk.f32.vlgmr.msra.gmra.mrb[0].mxu0 %vm220_vm1, %v211_v5 }
  0x87   : > { %v216_v6 = vpop.permute.xlu0 %215 }
  0xe9   : > { %v295_v7 = vpop.f32.mrb[0].mxu0 }
  0xea   : > { %v296_v8 = vadd.f32 %v295_v7, %v216_v6  ;;  %v297_v9 = vpop.f32.mrb[1].mxu0 }
  0xeb   : > { %v298_v10 = vadd.f32 %v297_v9, %v216_v6 }
  0xec   : > { %v300_v11 = vmax.f32 %v296_v8, 0.0 }
  0xed   : > { %v301_v12 = vmax.f32 %v298_v10, 0.0 }
  0xee   : > { %302 = vst [vmem:[%s208_s27] sm:$0xff] %v300_v11 }
  0xef   : > { %303 = vst [vmem:[%s208_s27 + $0x8] sm:$0xff] %v301_v12 }
  0xf0 PF: > { %s13_s14 = sadd.s32 1, %s457_s14   ;;  %s524_s12 = smov %s453_s13 }
  0xf1   : > { %p10_p5 = scmp.ge.s32.totalorder %s13_s14, 4   ;;  %s525_s13 = smov %s527_s15 }
  0xf3   :  { %12 = sbr.rel (!%p10_p5) target bundleno = 2 (0x2), region = 62 }

</bundles_post_ra>
